<compile_context>
chip_gen: v5e
topology: v5e:2x2
jax: 0.10.0
libtpu: 0.0.40
codegen_flags: <defaults>
</compile_context>

<pallas_src>
import jax
import jax.numpy as jnp
from jax.experimental import pallas as pl
from jax.experimental.pallas import tpu as pltpu

_LANE = 128          # vreg lane width
_TILE_ROWS = 512     # 512 x 128 x 4B = 256 KiB / f32 buffer; deep pipeline, tiny VMEM


def _zero_kernel(x_ref, o_ref):
    # out = x * 0.0  (VPU elementwise; preserves NaN/Inf -> NaN like torch.mul(0.0))
    o_ref[...] = (x_ref[...] * 0.0).astype(o_ref.dtype)


def zero_forward(x, stride):
    """Pallas implementation of Zero.forward.

    x: (N, C, H, W).  Returns (strided slice of) x multiplied by 0.0, i.e.
    zeros of shape (N, C, ceil(H/stride), ceil(W/stride)) (NaN/Inf inputs map
    to NaN, matching PyTorch).
    """
    if stride != 1:
        # Strided spatial gather (cheap wrapper glue; the values are about to
        # be multiplied by zero anyway, only the shape/NaN pattern matters).
        x = x[:, :, ::stride, ::stride]

    out_shape = x.shape
    dtype = x.dtype

    # Flatten to a lane-dense (rows, 128) slab so loads/stores are full vregs.
    flat = x.reshape(-1)
    total = flat.shape[0]
    rows = pl.cdiv(total, _LANE)
    tile_rows = min(_TILE_ROWS, rows)
    rows_pad = pl.cdiv(rows, tile_rows) * tile_rows
    total_pad = rows_pad * _LANE
    if total_pad != total:
        flat = jnp.pad(flat, (0, total_pad - total))
    x2d = flat.reshape(rows_pad, _LANE)

    grid = (rows_pad // tile_rows,)

    out2d = pl.pallas_call(
        _zero_kernel,
        out_shape=jax.ShapeDtypeStruct((rows_pad, _LANE), dtype),
        grid_spec=pltpu.PrefetchScalarGridSpec(
            num_scalar_prefetch=0,
            grid=grid,
            in_specs=[pl.BlockSpec((tile_rows, _LANE), lambda i: (i, 0))],
            out_specs=pl.BlockSpec((tile_rows, _LANE), lambda i: (i, 0)),
        ),
        compiler_params=pltpu.CompilerParams(
            dimension_semantics=("parallel",)),
    )(x2d)

    return out2d.reshape(-1)[:total].reshape(out_shape)


if __name__ == "__main__":
    # Small deterministic setup: N=2, C=4, H=W=16 (module: Zero(stride=2)).
    N, C, H, W = 2, 4, 16, 16
    key = jax.random.PRNGKey(0)
    x = jax.random.normal(key, (N, C, H, W), dtype=jnp.float32)

    # stride = 2 path: x[:, :, ::2, ::2].mul(0.0)
    stride = 2
    out = zero_forward(x, stride)
    jax.block_until_ready(out)
    assert out.shape == (N, C, H // stride, W // stride), out.shape
    assert bool(jnp.all(out == 0.0)), "stride=2 output is not all zeros"

    # stride = 1 path: x.mul(0.0)
    out1 = zero_forward(x, 1)
    jax.block_until_ready(out1)
    assert out1.shape == x.shape, out1.shape
    assert bool(jnp.all(out1 == 0.0)), "stride=1 output is not all zeros"

    print("KERNEL_OK")
</pallas_src>

<mosaic_0001>
module attributes {stable_mosaic.version = 11 : i64} {
  func.func @_zero_kernel(%arg0: i32, %arg1: memref<4x128xf32, #tpu.memory_space<vmem>>, %arg2: memref<4x128xf32, #tpu.memory_space<vmem>>) attributes {dimension_semantics = [#tpu.dimension_semantics<parallel>], iteration_bounds = array<i64: 1>, scalar_prefetch = 0 : i64, scratch_operands = 0 : i64, tpu.core_type = #tpu.core_type<tc>, window_params = [{transform_indices = @transform_0, window_bounds = array<i64: 4, 128>}, {transform_indices = @transform_1, window_bounds = array<i64: 4, 128>}]} {
    %c0 = arith.constant 0 : index
    %c0_0 = arith.constant 0 : index
    %0 = vector.load %arg1[%c0, %c0_0] : memref<4x128xf32, #tpu.memory_space<vmem>>, vector<4x128xf32>
    %cst = arith.constant 0.000000e+00 : f32
    %1 = vector.broadcast %cst : f32 to vector<4x128xf32>
    %2 = arith.mulf %0, %1 : vector<4x128xf32>
    %c0_1 = arith.constant 0 : index
    %c0_2 = arith.constant 0 : index
    %3 = vector.load %arg2[%c0_1, %c0_2] : memref<4x128xf32, #tpu.memory_space<vmem>>, vector<4x128xf32>
    tpu.vector_store %arg2[%c0_1, %c0_2], %2 {strides = array<i32>} : memref<4x128xf32, #tpu.memory_space<vmem>>, vector<4x128xf32>,
    return
  }
  func.func @transform_0(%arg0: i32) -> (i32, i32) {
    %c0_i32 = arith.constant 0 : i32
    %c0_i32_0 = arith.constant 0 : i32
    return %arg0, %c0_i32 : i32, i32
  }
  func.func @transform_1(%arg0: i32) -> (i32, i32) {
    %c0_i32 = arith.constant 0 : i32
    %c0_i32_0 = arith.constant 0 : i32
    return %arg0, %c0_i32 : i32, i32
  }
}

</mosaic_0001>

<bundles_post_ra>
// kernel: tpu_custom_call.1
= control target key start
LH: loop header
LB: loop body
LE: loop exit
PB: predicated region body
PF: predicated region fallthrough
CT: control target
= control target key end

     0   :  { %6 = vsyncpa [#allocation3], 0  ;;  %s115_s0 = inlined_call_operand.hbm [shape: f32[4,128], index: 0, kind: input, shape index: {}]   ;;  %s116_s1 = inlined_call_operand.hbm [shape: f32[4,128], index: 1, kind: output, shape index: {}]  }
   0x1   :  { %7 = vsyncpa [#allocation4], 0  ;;  %s13_s8 = sshll.u32 %s115_s0, 4  ;;  %s97_s9 = smov [#allocation2]   ;;  %s14_s8 = int_to_ptr.hbm [resolvable:$true] %s13_s8 }
   0x2   :  { %s15_s10 = sshll.u32 %s97_s9, 4  ;;  %s16_s10 = int_to_ptr.vmem [resolvable:$true] %s15_s10 }
   0x3   :  { %18 = dma.hbm_to_vmem [thread:$0]  %s14_s8, 64, %s16_s10, [#allocation3]  }
   0x4   :  { %93 = dma.done.wait [#allocation3], 64  }
   0x5   :  { %94 = vsyncadd [#allocation3], 4294967232  ;;  %s98_s11 = smov [#allocation5]   ;;  %s33_s15 = sshll.u32 %s116_s1, 4  ;;  %v23_v0 = vld [vmem:[#allocation2] sm:$0xf]  ;;  %s34_s15 = int_to_ptr.hbm [resolvable:$true] %s33_s15 }
   0x6   :  { %s31_s12 = sshll.u32 %s98_s11, 4  ;;  %v24_v1 = vmul.f32 0.0, %v23_v0  ;;  %s32_s12 = int_to_ptr.vmem [resolvable:$true] %s31_s12 }
   0x8   :  { %25 = vst [vmem:[#allocation5] sm:$0xf] %v24_v1 }
   0x9   :  { %36 = dma.vmem_to_hbm [thread:$0]  %s32_s12, 64, %s34_s15, [#allocation4]  }
   0xa   :  { %95 = dma.done.wait [#allocation4], 64  }
   0xb   :  { %96 = vsyncadd [#allocation4], 4294967232 }
   0xc   :  { %41 = vsyncpa [#allocation3], 1 }
   0xd   :  { %42 = vsyncpa [#allocation4], 1 }

</bundles_post_ra>
